<compile_context>
chip_gen: v6e
topology: v6e:2x2x1
jax: 0.10.0
libtpu: 0.0.40
codegen_flags: <defaults>
</compile_context>

<pallas_src>
import functools

import jax
import jax.numpy as jnp
from jax import lax
from jax.experimental import pallas as pl
from jax.experimental.pallas import tpu as pltpu


def _fused_conv_relu_kernel(x_ref, w_ref, b_ref, o_ref, *, kh, kw, dil, wp):
    """One image per grid step.

    x_ref: (1, C, P)       flattened padded input image (bf16)
    w_ref: (KH*KW, OC, C)  per-tap weight matrices (bf16)
    b_ref: (OC, 1)         bias (f32)
    o_ref: (1, OC, L)      flattened output, L = OH * Wp (the Wp-OW garbage
                           columns per row are cropped by the wrapper)
    """
    oc = o_ref.shape[1]
    out_len = o_ref.shape[2]
    acc = jnp.zeros((oc, out_len), jnp.float32)
    # Static loop over kernel taps: each tap is one contiguous ref slice plus
    # one small MXU matmul, accumulated in f32.
    for i in range(kh):
        for j in range(kw):
            base = i * dil * wp + j * dil
            slab = x_ref[0, :, base:base + out_len]            # (C, L)
            acc += jnp.dot(w_ref[i * kw + j], slab,
                           preferred_element_type=jnp.float32)
    out = jnp.maximum(acc + b_ref[...], 0.0)                   # bias + ReLU in f32
    o_ref[0] = out.astype(o_ref.dtype)


@functools.partial(jax.jit,
                   static_argnames=("stride", "pad", "dilation", "compute_dtype"))
def conv_relu(x, weight, bias, *, stride=1, pad=1, dilation=1,
              compute_dtype=jnp.bfloat16):
    """ConvReLU forward. x: (N, C, H, W) NCHW, weight: (OC, C, KH, KW), bias: (OC,)."""
    N, C, H, W = x.shape
    OC, _, KH, KW = weight.shape
    s, d, p = stride, dilation, pad
    OH = (H + 2 * p - d * (KH - 1) - 1) // s + 1
    OW = (W + 2 * p - d * (KW - 1) - 1) // s + 1

    if s == 1:
        # Fused-im2col path: flatten the spatially padded image; tap (i, j) is
        # then the contiguous flat window [i*d*Wp + j*d, ... + OH*Wp).
        Wp = W + 2 * p
        tail = d * (KW - 1)                          # flat elems needed past Hp*Wp
        extra_h = -(-tail // Wp) if tail else 0      # cdiv; folded into spatial pad
        xq = jnp.pad(x.astype(compute_dtype),
                     ((0, 0), (0, 0), (p, p + extra_h), (p, p)))
        Hq = H + 2 * p + extra_h
        x_flat = xq.reshape(N, C, Hq * Wp)
        w_k = weight.astype(compute_dtype).transpose(2, 3, 0, 1)   # (KH,KW,OC,C)
        w_k = w_k.reshape(KH * KW, OC, C)
        kh_eff, kw_eff, d_eff, col = KH, KW, d, Wp
    else:
        # stride > 1: pre-shift + subsample the taps with cheap strided slices
        # and run the same kernel as a 1x1 conv over KH*KW*C stacked channels.
        # TODO(synk): fold the strided tap extraction into the kernel as well.
        xp = jnp.pad(x.astype(compute_dtype), ((0, 0), (0, 0), (p, p), (p, p)))
        taps = []
        for i in range(KH):
            for j in range(KW):
                taps.append(xp[:, :,
                                i * d: i * d + (OH - 1) * s + 1: s,
                                j * d: j * d + (OW - 1) * s + 1: s])
        x_flat = jnp.stack(taps, axis=1).reshape(N, KH * KW * C, OH * OW)
        w_k = weight.astype(compute_dtype).transpose(0, 2, 3, 1)   # (OC,KH,KW,C)
        w_k = w_k.reshape(1, OC, KH * KW * C)
        kh_eff, kw_eff, d_eff, col = 1, 1, 1, OW

    C_in = x_flat.shape[1]
    P = x_flat.shape[2]
    L = OH * col
    b2d = bias.astype(jnp.float32).reshape(OC, 1)

    kernel = functools.partial(_fused_conv_relu_kernel,
                               kh=kh_eff, kw=kw_eff, dil=d_eff, wp=col)

    out_flat = pl.pallas_call(
        kernel,
        out_shape=jax.ShapeDtypeStruct((N, OC, L), x.dtype),
        grid_spec=pltpu.PrefetchScalarGridSpec(
            num_scalar_prefetch=0,
            grid=(N,),                                             # one image / step
            in_specs=[
                pl.BlockSpec((1, C_in, P), lambda n: (n, 0, 0)),   # this image
                pl.BlockSpec((kh_eff * kw_eff, OC, C_in), lambda n: (0, 0, 0)),
                pl.BlockSpec((OC, 1), lambda n: (0, 0)),
            ],
            out_specs=pl.BlockSpec((1, OC, L), lambda n: (n, 0, 0)),
        ),
        compiler_params=pltpu.CompilerParams(
            dimension_semantics=("parallel",),          # shards over v7x's 2 TCs
            vmem_limit_bytes=32 * 1024 * 1024),
    )(x_flat, w_k, b2d)

    # (N, OC, OH*col) -> (N, OC, OH, col) -> crop padded columns -> NCHW.
    return out_flat.reshape(N, OC, OH, col)[:, :, :, :OW]


if __name__ == "__main__":
    # ConvReLU(in_channel=4, out_channel=8, kernel=3, stride=1, pad=1, dilation=1)
    in_channel, out_channel, kernel, stride, pad, dilation = 4, 8, 3, 1, 1, 1
    N, H, W = 2, 16, 16

    key = jax.random.PRNGKey(0)
    kx, kw_, kb = jax.random.split(key, 3)
    x = jax.random.normal(kx, (N, in_channel, H, W), dtype=jnp.float32)
    weight = jax.random.normal(
        kw_, (out_channel, in_channel, kernel, kernel), dtype=jnp.float32) * 0.1
    bias = jax.random.normal(kb, (out_channel,), dtype=jnp.float32) * 0.1

    y = conv_relu(x, weight, bias, stride=stride, pad=pad, dilation=dilation)
    y = jax.block_until_ready(y)

    # Reference: plain JAX conv + ReLU on bf16-rounded operands (the kernel
    # feeds the MXU bf16 operands with f32 accumulation).
    xr = x.astype(jnp.bfloat16).astype(jnp.float32)
    wr = weight.astype(jnp.bfloat16).astype(jnp.float32)
    ref = lax.conv_general_dilated(
        xr, wr, window_strides=(stride, stride),
        padding=[(pad, pad), (pad, pad)],
        rhs_dilation=(dilation, dilation),
        dimension_numbers=("NCHW", "OIHW", "NCHW"))
    ref = jnp.maximum(ref + bias.reshape(1, out_channel, 1, 1), 0.0)
    assert y.shape == ref.shape, (y.shape, ref.shape)
    assert jnp.allclose(y, ref, atol=1e-3, rtol=1e-3), float(jnp.max(jnp.abs(y - ref)))

    print("KERNEL_OK")
</pallas_src>

<mosaic_0001>
module attributes {stable_mosaic.version = 11 : i64} {
  func.func @_fused_conv_relu_kernel(%arg0: i32, %arg1: memref<1x4x342xbf16, #tpu.memory_space<vmem>>, %arg2: memref<9x8x4xbf16, #tpu.memory_space<vmem>>, %arg3: memref<8x1xf32, #tpu.memory_space<vmem>>, %arg4: memref<1x8x288xf32, #tpu.memory_space<vmem>>) attributes {dimension_semantics = [#tpu.dimension_semantics<parallel>], iteration_bounds = array<i64: 2>, scalar_prefetch = 0 : i64, scratch_operands = 0 : i64, tpu.core_type = #tpu.core_type<tc>, window_params = [{transform_indices = @transform_0, window_bounds = array<i64: 1, 4, 342>}, {pipeline_mode = #tpu.pipeline_mode<synchronous>, transform_indices = @transform_1, window_bounds = array<i64: 9, 8, 4>}, {pipeline_mode = #tpu.pipeline_mode<synchronous>, transform_indices = @transform_2, window_bounds = array<i64: 8, 1>}, {transform_indices = @transform_3, window_bounds = array<i64: 1, 8, 288>}]} {
    %cst = arith.constant 0.000000e+00 : f32
    %0 = vector.broadcast %cst : f32 to vector<8x288xf32>
    %c0 = arith.constant 0 : index
    %c0_0 = arith.constant 0 : index
    %c0_1 = arith.constant 0 : index
    %1 = vector.load %arg1[%c0, %c0_0, %c0_1] : memref<1x4x342xbf16, #tpu.memory_space<vmem>>, vector<1x4x288xbf16>
    %2 = vector.shape_cast %1 : vector<1x4x288xbf16> to vector<4x288xbf16>
    %c0_2 = arith.constant 0 : index
    %c0_3 = arith.constant 0 : index
    %c0_4 = arith.constant 0 : index
    %3 = vector.load %arg2[%c0_2, %c0_3, %c0_4] : memref<9x8x4xbf16, #tpu.memory_space<vmem>>, vector<1x8x4xbf16>
    %4 = vector.shape_cast %3 : vector<1x8x4xbf16> to vector<8x4xbf16>
    %cst_5 = arith.constant dense<0.000000e+00> : vector<8x288xf32>
    %5 = tpu.matmul %4, %2, %cst_5 {dimension_numbers = #tpu.dot_dimension_numbers<[1], [0], [0], [1], [0, 0, 1, 1], [], []>} : vector<8x4xbf16>, vector<4x288xbf16>, vector<8x288xf32> -> vector<8x288xf32>
    %6 = arith.addf %0, %5 : vector<8x288xf32>
    %c0_6 = arith.constant 0 : index
    %c0_7 = arith.constant 0 : index
    %c1 = arith.constant 1 : index
    %7 = vector.load %arg1[%c0_6, %c0_7, %c1] : memref<1x4x342xbf16, #tpu.memory_space<vmem>>, vector<1x4x288xbf16>
    %8 = vector.shape_cast %7 : vector<1x4x288xbf16> to vector<4x288xbf16>
    %c1_8 = arith.constant 1 : index
    %c0_9 = arith.constant 0 : index
    %c0_10 = arith.constant 0 : index
    %9 = vector.load %arg2[%c1_8, %c0_9, %c0_10] : memref<9x8x4xbf16, #tpu.memory_space<vmem>>, vector<1x8x4xbf16>
    %10 = vector.shape_cast %9 : vector<1x8x4xbf16> to vector<8x4xbf16>
    %cst_11 = arith.constant dense<0.000000e+00> : vector<8x288xf32>
    %11 = tpu.matmul %10, %8, %cst_11 {dimension_numbers = #tpu.dot_dimension_numbers<[1], [0], [0], [1], [0, 0, 1, 1], [], []>} : vector<8x4xbf16>, vector<4x288xbf16>, vector<8x288xf32> -> vector<8x288xf32>
    %12 = arith.addf %6, %11 : vector<8x288xf32>
    %c0_12 = arith.constant 0 : index
    %c0_13 = arith.constant 0 : index
    %c2 = arith.constant 2 : index
    %13 = vector.load %arg1[%c0_12, %c0_13, %c2] : memref<1x4x342xbf16, #tpu.memory_space<vmem>>, vector<1x4x288xbf16>
    %14 = vector.shape_cast %13 : vector<1x4x288xbf16> to vector<4x288xbf16>
    %c2_14 = arith.constant 2 : index
    %c0_15 = arith.constant 0 : index
    %c0_16 = arith.constant 0 : index
    %15 = vector.load %arg2[%c2_14, %c0_15, %c0_16] : memref<9x8x4xbf16, #tpu.memory_space<vmem>>, vector<1x8x4xbf16>
    %16 = vector.shape_cast %15 : vector<1x8x4xbf16> to vector<8x4xbf16>
    %cst_17 = arith.constant dense<0.000000e+00> : vector<8x288xf32>
    %17 = tpu.matmul %16, %14, %cst_17 {dimension_numbers = #tpu.dot_dimension_numbers<[1], [0], [0], [1], [0, 0, 1, 1], [], []>} : vector<8x4xbf16>, vector<4x288xbf16>, vector<8x288xf32> -> vector<8x288xf32>
    %18 = arith.addf %12, %17 : vector<8x288xf32>
    %c0_18 = arith.constant 0 : index
    %c0_19 = arith.constant 0 : index
    %c18 = arith.constant 18 : index
    %19 = vector.load %arg1[%c0_18, %c0_19, %c18] : memref<1x4x342xbf16, #tpu.memory_space<vmem>>, vector<1x4x288xbf16>
    %20 = vector.shape_cast %19 : vector<1x4x288xbf16> to vector<4x288xbf16>
    %c3 = arith.constant 3 : index
    %c0_20 = arith.constant 0 : index
    %c0_21 = arith.constant 0 : index
    %21 = vector.load %arg2[%c3, %c0_20, %c0_21] : memref<9x8x4xbf16, #tpu.memory_space<vmem>>, vector<1x8x4xbf16>
    %22 = vector.shape_cast %21 : vector<1x8x4xbf16> to vector<8x4xbf16>
    %cst_22 = arith.constant dense<0.000000e+00> : vector<8x288xf32>
    %23 = tpu.matmul %22, %20, %cst_22 {dimension_numbers = #tpu.dot_dimension_numbers<[1], [0], [0], [1], [0, 0, 1, 1], [], []>} : vector<8x4xbf16>, vector<4x288xbf16>, vector<8x288xf32> -> vector<8x288xf32>
    %24 = arith.addf %18, %23 : vector<8x288xf32>
    %c0_23 = arith.constant 0 : index
    %c0_24 = arith.constant 0 : index
    %c19 = arith.constant 19 : index
    %25 = vector.load %arg1[%c0_23, %c0_24, %c19] : memref<1x4x342xbf16, #tpu.memory_space<vmem>>, vector<1x4x288xbf16>
    %26 = vector.shape_cast %25 : vector<1x4x288xbf16> to vector<4x288xbf16>
    %c4 = arith.constant 4 : index
    %c0_25 = arith.constant 0 : index
    %c0_26 = arith.constant 0 : index
    %27 = vector.load %arg2[%c4, %c0_25, %c0_26] : memref<9x8x4xbf16, #tpu.memory_space<vmem>>, vector<1x8x4xbf16>
    %28 = vector.shape_cast %27 : vector<1x8x4xbf16> to vector<8x4xbf16>
    %cst_27 = arith.constant dense<0.000000e+00> : vector<8x288xf32>
    %29 = tpu.matmul %28, %26, %cst_27 {dimension_numbers = #tpu.dot_dimension_numbers<[1], [0], [0], [1], [0, 0, 1, 1], [], []>} : vector<8x4xbf16>, vector<4x288xbf16>, vector<8x288xf32> -> vector<8x288xf32>
    %30 = arith.addf %24, %29 : vector<8x288xf32>
    %c0_28 = arith.constant 0 : index
    %c0_29 = arith.constant 0 : index
    %c20 = arith.constant 20 : index
    %31 = vector.load %arg1[%c0_28, %c0_29, %c20] : memref<1x4x342xbf16, #tpu.memory_space<vmem>>, vector<1x4x288xbf16>
    %32 = vector.shape_cast %31 : vector<1x4x288xbf16> to vector<4x288xbf16>
    %c5 = arith.constant 5 : index
    %c0_30 = arith.constant 0 : index
    %c0_31 = arith.constant 0 : index
    %33 = vector.load %arg2[%c5, %c0_30, %c0_31] : memref<9x8x4xbf16, #tpu.memory_space<vmem>>, vector<1x8x4xbf16>
    %34 = vector.shape_cast %33 : vector<1x8x4xbf16> to vector<8x4xbf16>
    %cst_32 = arith.constant dense<0.000000e+00> : vector<8x288xf32>
    %35 = tpu.matmul %34, %32, %cst_32 {dimension_numbers = #tpu.dot_dimension_numbers<[1], [0], [0], [1], [0, 0, 1, 1], [], []>} : vector<8x4xbf16>, vector<4x288xbf16>, vector<8x288xf32> -> vector<8x288xf32>
    %36 = arith.addf %30, %35 : vector<8x288xf32>
    %c0_33 = arith.constant 0 : index
    %c0_34 = arith.constant 0 : index
    %c36 = arith.constant 36 : index
    %37 = vector.load %arg1[%c0_33, %c0_34, %c36] : memref<1x4x342xbf16, #tpu.memory_space<vmem>>, vector<1x4x288xbf16>
    %38 = vector.shape_cast %37 : vector<1x4x288xbf16> to vector<4x288xbf16>
    %c6 = arith.constant 6 : index
    %c0_35 = arith.constant 0 : index
    %c0_36 = arith.constant 0 : index
    %39 = vector.load %arg2[%c6, %c0_35, %c0_36] : memref<9x8x4xbf16, #tpu.memory_space<vmem>>, vector<1x8x4xbf16>
    %40 = vector.shape_cast %39 : vector<1x8x4xbf16> to vector<8x4xbf16>
    %cst_37 = arith.constant dense<0.000000e+00> : vector<8x288xf32>
    %41 = tpu.matmul %40, %38, %cst_37 {dimension_numbers = #tpu.dot_dimension_numbers<[1], [0], [0], [1], [0, 0, 1, 1], [], []>} : vector<8x4xbf16>, vector<4x288xbf16>, vector<8x288xf32> -> vector<8x288xf32>
    %42 = arith.addf %36, %41 : vector<8x288xf32>
    %c0_38 = arith.constant 0 : index
    %c0_39 = arith.constant 0 : index
    %c37 = arith.constant 37 : index
    %43 = vector.load %arg1[%c0_38, %c0_39, %c37] : memref<1x4x342xbf16, #tpu.memory_space<vmem>>, vector<1x4x288xbf16>
    %44 = vector.shape_cast %43 : vector<1x4x288xbf16> to vector<4x288xbf16>
    %c7 = arith.constant 7 : index
    %c0_40 = arith.constant 0 : index
    %c0_41 = arith.constant 0 : index
    %45 = vector.load %arg2[%c7, %c0_40, %c0_41] : memref<9x8x4xbf16, #tpu.memory_space<vmem>>, vector<1x8x4xbf16>
    %46 = vector.shape_cast %45 : vector<1x8x4xbf16> to vector<8x4xbf16>
    %cst_42 = arith.constant dense<0.000000e+00> : vector<8x288xf32>
    %47 = tpu.matmul %46, %44, %cst_42 {dimension_numbers = #tpu.dot_dimension_numbers<[1], [0], [0], [1], [0, 0, 1, 1], [], []>} : vector<8x4xbf16>, vector<4x288xbf16>, vector<8x288xf32> -> vector<8x288xf32>
    %48 = arith.addf %42, %47 : vector<8x288xf32>
    %c0_43 = arith.constant 0 : index
    %c0_44 = arith.constant 0 : index
    %c38 = arith.constant 38 : index
    %49 = vector.load %arg1[%c0_43, %c0_44, %c38] : memref<1x4x342xbf16, #tpu.memory_space<vmem>>, vector<1x4x288xbf16>
    %50 = vector.shape_cast %49 : vector<1x4x288xbf16> to vector<4x288xbf16>
    %c8 = arith.constant 8 : index
    %c0_45 = arith.constant 0 : index
    %c0_46 = arith.constant 0 : index
    %51 = vector.load %arg2[%c8, %c0_45, %c0_46] : memref<9x8x4xbf16, #tpu.memory_space<vmem>>, vector<1x8x4xbf16>
    %52 = vector.shape_cast %51 : vector<1x8x4xbf16> to vector<8x4xbf16>
    %cst_47 = arith.constant dense<0.000000e+00> : vector<8x288xf32>
    %53 = tpu.matmul %52, %50, %cst_47 {dimension_numbers = #tpu.dot_dimension_numbers<[1], [0], [0], [1], [0, 0, 1, 1], [], []>} : vector<8x4xbf16>, vector<4x288xbf16>, vector<8x288xf32> -> vector<8x288xf32>
    %54 = arith.addf %48, %53 : vector<8x288xf32>
    %c0_48 = arith.constant 0 : index
    %c0_49 = arith.constant 0 : index
    %55 = vector.load %arg3[%c0_48, %c0_49] : memref<8x1xf32, #tpu.memory_space<vmem>>, vector<8x1xf32>
    %56 = vector.broadcast %55 : vector<8x1xf32> to vector<8x288xf32>
    %57 = arith.addf %54, %56 : vector<8x288xf32>
    %cst_50 = arith.constant 0.000000e+00 : f32
    %58 = vector.broadcast %cst_50 : f32 to vector<8x288xf32>
    %59 = arith.maximumf %57, %58 : vector<8x288xf32>
    %c0_51 = arith.constant 0 : index
    %c0_52 = arith.constant 0 : index
    %c0_53 = arith.constant 0 : index
    %60 = vector.load %arg4[%c0_51, %c0_52, %c0_53] : memref<1x8x288xf32, #tpu.memory_space<vmem>>, vector<1x8x288xf32>
    %61 = vector.shape_cast %60 : vector<1x8x288xf32> to vector<8x288xf32>
    %62 = vector.shape_cast %59 : vector<8x288xf32> to vector<1x8x288xf32>
    tpu.vector_store %arg4[%c0_51, %c0_52, %c0_53], %62 {strides = array<i32>} : memref<1x8x288xf32, #tpu.memory_space<vmem>>, vector<1x8x288xf32>,
    return
  }
  func.func @transform_0(%arg0: i32) -> (i32, i32, i32) {
    %c0_i32 = arith.constant 0 : i32
    %c0_i32_0 = arith.constant 0 : i32
    %c0_i32_1 = arith.constant 0 : i32
    return %arg0, %c0_i32, %c0_i32_0 : i32, i32, i32
  }
  func.func @transform_1(%arg0: i32) -> (i32, i32, i32) {
    %c0_i32 = arith.constant 0 : i32
    %c0_i32_0 = arith.constant 0 : i32
    %c0_i32_1 = arith.constant 0 : i32
    %c0_i32_2 = arith.constant 0 : i32
    return %c0_i32, %c0_i32_0, %c0_i32_1 : i32, i32, i32
  }
  func.func @transform_2(%arg0: i32) -> (i32, i32) {
    %c0_i32 = arith.constant 0 : i32
    %c0_i32_0 = arith.constant 0 : i32
    %c0_i32_1 = arith.constant 0 : i32
    return %c0_i32, %c0_i32_0 : i32, i32
  }
  func.func @transform_3(%arg0: i32) -> (i32, i32, i32) {
    %c0_i32 = arith.constant 0 : i32
    %c0_i32_0 = arith.constant 0 : i32
    %c0_i32_1 = arith.constant 0 : i32
    return %arg0, %c0_i32, %c0_i32_0 : i32, i32, i32
  }
}

</mosaic_0001>

<bundles_post_ra>
// kernel: conv_relu.1
= control target key start
LH: loop header
LB: loop body
LE: loop exit
PB: predicated region body
PF: predicated region fallthrough
CT: control target
= control target key end

     0   :  { %s1523_s12 = smov 0   ;;  %s1700_s0 = inlined_call_operand.vmem [shape: bf16[2,4,342], index: 0, kind: input, shape index: {}]   ;;  %s1701_s1 = inlined_call_operand.vmem [shape: bf16[9,8,4], index: 1, kind: input, shape index: {}]   ;;  %s1702_s2 = inlined_call_operand.vmem [shape: f32[8,1], index: 2, kind: input, shape index: {}]   ;;  %s1703_s3 = inlined_call_operand.vmem [shape: f32[2,8,288], index: 3, kind: output, shape index: {}]  }
   0x1 LB: > { %s1336_s13 = sadd.s32 4294967295, %s1489_s12   ;;  %p1340_p0 = scmp.ge.s32.totalorder %s1489_s12, 1  ;;  %s1489_s12 = sphi %s1523_s12, %s13_s12  }
   0x2   : > { %p137_p1 = scmp.lt.s32.totalorder %s1489_s12, 3 }
   0x4   : > { %p138_p2 = pnand %p1340_p0, %p137_p1 }
   0x5   : > { %p161_p3 = scmp.lt.s32.totalorder (!%p138_p2), %s1336_s13, 1  ;;  %s1495_s18 = smov (!%p138_p2), 127  }
   0x6   : > { %141 = sbr.rel (%p138_p2) target bundleno = 410 (0x19a), region = 32  ;;  %s1496_s19 = smov (!%p138_p2), 126  }
   0x7   : > { %s1497_s20 = smov (!%p138_p2), 110   ;;  %s1498_s21 = smov (!%p138_p2), 109  }
   0x8   : > { %s1499_s22 = smov (!%p138_p2), 108   ;;  %s1500_s23 = smov (!%p138_p2), 92  }
   0x9   : > { %s1501_s24 = smov (!%p138_p2), 91   ;;  %s1502_s25 = smov (!%p138_p2), 90  }
   0xb   : > { %v181_v0 = vlaneseq  ;;  %v1491_v1 = vmov 1983009808   ;;  %v1492_v3 = vmov 0.0   ;;  %s1705_s13 = smov (!%p161_p3, %s1336_s13), 1  ;;  %vm1493_vm0 = vmmov 0   ;;  %v1265_v48 = vld [vmem:[%s1702_s2] sm:$0xff] }
   0xc   : > { %v179_v2 = vunpack.c.l.s4 %v1491_v1  ;;  %1398 = vmatprep.subr.bf16.mxu1 %v1492_v3  ;;  %1400 = vmatprep.mubr.msk.bf16.mxu1 %vm1493_vm0, %v1492_v3  ;;  %s1452_s14 = smul.u32 6, %s1705_s13  ;;  %v1494_v6 = vmov 0   ;;  %vm206_vm1 = vcmask 1041408   ;;  %vm199_vm2 = vcmask 1039360   ;;  %v1343_v53 = vld [vmem:[%s1701_s1 + $0x4] sm:$0xf] }
   0xd   : > { %v182_v4 = vshrl.u32 %v181_v0, 7  ;;  %248 = vmatprep.mubr.bf16.mxu0 %v1494_v6  ;;  %1474 = vset.pattern.permute.xlu0 %v1494_v6  ;;  %vm202_vm3 = vcmask 31744   ;;  %vm416_vm4 = vcmask 1031168   ;;  %v173_v63 = vld [vmem:[%s1701_s1] sm:$0xf]  ;;  %vm541_vm5 = vcmask 900096  }
   0xe   : > { %v180_v5 = vunpack.c.0.s8 %v179_v2  ;;  %s1544_s17 = scalar_lea.vmem %s1700_s0, %s1452_s14  ;;  %vm666_vm6 = vcmask 891904   ;;  %vm791_vm7 = vcmask 883712   ;;  %vm916_vm8 = vcmask 752640  }
   0xf   : > { %v172_v8 = vld [vmem:[%s1544_s17] sm:$0x3f]  ;;  %vm1041_vm9 = vcmask 744448   ;;  %vm1166_vm10 = vcmask 736256   ;;  %vm1279_vm11 = vcmask 261120  }
  0x10   : > { %v1539_v7 = vsub.s32 %v180_v5, %v182_v4  ;;  %v177_v10 = vcombine.high %v172_v8, %v172_v8  ;;  %v390_v11 = vld [vmem:[%s1544_s17] sm:$0x3f] }
  0x11   : > { %v394_v15 = vcombine.high %v390_v11, %v390_v11  ;;  %v515_v17 = vld [vmem:[%s1544_s17] sm:$0x3f] }
  0x12   : > { %v1548_v9 = vrot.slane %v172_v8, %v1539_v7  ;;  %v1553_v12 = vrot.slane %v177_v10, %v1539_v7  ;;  %v401_v14 = vrot.slane %v390_v11, %v1539_v7  ;;  %v526_v19 = vrot.slane %v515_v17, %v1539_v7  ;;  %v640_v22 = vld [vmem:[%s1544_s17] sm:$0x3f]  ;;  %v1350_v10 = vld [vmem:[%s1701_s1 + $0x8] sm:$0xf] }
  0x13   : > { %v408_v18 = vrot.slane %v394_v15, %v1539_v7  ;;  %v519_v20 = vcombine.high %v515_v17, %v515_v17  ;;  %v651_v24 = vrot.slane %v640_v22, %v1539_v7  ;;  %v644_v25 = vcombine.high %v640_v22, %v640_v22  ;;  %v765_v27 = vld [vmem:[%s1544_s17] sm:$0x3f] }
  0x14   : > { %193 = vrot.lane.b32.xlu0 %v1548_v9, %s1495_s18  ;;  %v1557_v13 = vcombine.high %v1548_v9, %v1548_v9  ;;  %197 = vrot.lane.b32.xlu1 %v1553_v12, %s1495_s18  ;;  %v409_v16 = vcombine.high %v401_v14, %v401_v14  ;;  %v534_v21 = vcombine.high %v526_v19, %v526_v19  ;;  %v890_v32 = vld [vmem:[%s1544_s17] sm:$0x3f]  ;;  %v307_v56 = vsel %vm206_vm1, %v1553_v12, 0 }
  0x15   : > { %v533_v23 = vrot.slane %v519_v20, %v1539_v7  ;;  %v659_v26 = vcombine.high %v651_v24, %v651_v24  ;;  %v658_v28 = vrot.slane %v644_v25, %v1539_v7  ;;  %v776_v29 = vrot.slane %v765_v27, %v1539_v7  ;;  %v1015_v37 = vld [vmem:[%s1544_s17] sm:$0x3f] }
  0x16   : > { %v769_v30 = vcombine.high %v765_v27, %v765_v27  ;;  %v901_v34 = vrot.slane %v890_v32, %v1539_v7  ;;  %v894_v35 = vcombine.high %v890_v32, %v890_v32  ;;  %v1026_v39 = vrot.slane %v1015_v37, %v1539_v7  ;;  %v1140_v42 = vld [vmem:[%s1544_s17] sm:$0x3f]  ;;  %v1358_v27 = vld [vmem:[%s1701_s1 + $0x10] sm:$0xf] }
  0x17   : > { %v784_v31 = vcombine.high %v776_v29, %v776_v29  ;;  %v1019_v40 = vcombine.high %v1015_v37, %v1015_v37  ;;  %v1151_v44 = vrot.slane %v1140_v42, %v1539_v7  ;;  %v1144_v45 = vcombine.high %v1140_v42, %v1140_v42  ;;  %v1366_v42 = vld [vmem:[%s1701_s1 + $0x18] sm:$0xf] }
  0x18   : > { %195 = vrot.lane.b32.xlu0 %v1557_v13, %s1495_s18  ;;  %410 = vrot.lane.b32.xlu1 %v401_v14, %s1496_s19  ;;  %v783_v33 = vrot.slane %v769_v30, %v1539_v7  ;;  %v909_v36 = vcombine.high %v901_v34, %v901_v34  ;;  %v908_v38 = vrot.slane %v894_v35, %v1539_v7  ;;  %v301_v59 = vsel %vm206_vm1, %v1548_v9, 0  ;;  %v1362_v35 = vld [vmem:[%s1701_s1 + $0x14] sm:$0xf] }
  0x19   : > { %v1034_v41 = vcombine.high %v1026_v39, %v1026_v39  ;;  %v1033_v43 = vrot.slane %v1019_v40, %v1539_v7  ;;  %v1159_v46 = vcombine.high %v1151_v44, %v1151_v44  ;;  %v1158_v47 = vrot.slane %v1144_v45, %v1539_v7 }
  0x1c   : > { %412 = vrot.lane.b32.xlu0 %v409_v16, %s1496_s19  ;;  %414 = vrot.lane.b32.xlu1 %v408_v18, %s1496_s19 }
  0x20   : > { %535 = vrot.lane.b32.xlu0 %v526_v19, %s1497_s20  ;;  %537 = vrot.lane.b32.xlu1 %v534_v21, %s1497_s20  ;;  %v1354_v19 = vld [vmem:[%s1701_s1 + $0xc] sm:$0xf] }
  0x24   : > { %539 = vrot.lane.b32.xlu0 %v533_v23, %s1497_s20  ;;  %660 = vrot.lane.b32.xlu1 %v651_v24, %s1498_s21 }
  0x28   : > { %662 = vrot.lane.b32.xlu0 %v659_v26, %s1498_s21  ;;  %664 = vrot.lane.b32.xlu1 %v658_v28, %s1498_s21  ;;  %s1453_s21 = smul.u32 24, %s1705_s13 }
  0x2c   : > { %785 = vrot.lane.b32.xlu0 %v776_v29, %s1499_s22  ;;  %787 = vrot.lane.b32.xlu1 %v784_v31, %s1499_s22 }
  0x30   : > { %789 = vrot.lane.b32.xlu0 %v783_v33, %s1499_s22  ;;  %910 = vrot.lane.b32.xlu1 %v901_v34, %s1500_s23 }
  0x34   : > { %912 = vrot.lane.b32.xlu0 %v909_v36, %s1500_s23  ;;  %914 = vrot.lane.b32.xlu1 %v908_v38, %s1500_s23 }
  0x38   : > { %1035 = vrot.lane.b32.xlu0 %v1026_v39, %s1501_s24  ;;  %1037 = vrot.lane.b32.xlu1 %v1034_v41, %s1501_s24 }
  0x3c   : > { %1039 = vrot.lane.b32.xlu0 %v1033_v43, %s1501_s24  ;;  %1160 = vrot.lane.b32.xlu1 %v1151_v44, %s1502_s25  ;;  %s170_s24 = scalar_lea.vmem %s1703_s3, %s1453_s21 }
  0x40   : > { %1162 = vrot.lane.b32.xlu0 %v1159_v46, %s1502_s25  ;;  %1164 = vrot.lane.b32.xlu1 %v1158_v47, %s1502_s25 }
  0x44   : > { %1268 = vperm.xlu0 %1474, %v1265_v48  }
  0x86   : > { %v194_v49 = vpop.permute.xlu0 %193  ;;  %v198_v50 = vpop.permute.xlu1 %197 }
  0x87   : > { %v214_v51 = vsel %vm206_vm1, %v198_v50, 0 }
  0x88   : > { %1399 = vmatpush3.bf16.msra.mxu1 %v214_v51 }
  0x89   : > { %1404 = vmatprep.subr.bf16.mxu1 %v1492_v3 }
  0x8a   : > { %v196_v52 = vpop.permute.xlu0 %195  ;;  %v411_v58 = vpop.permute.xlu1 %410 }
  0x8b   : > { %v201_v54 = vsel %vm199_vm2, %v196_v52, %v198_v50  ;;  %v200_v55 = vsel %vm199_vm2, %v194_v49, %v196_v52  ;;  %1401 = vmatmul.mubr.msk.bf16.vlgmr.msra.gmra.mxu1 %vm202_vm3, %v1343_v53  ;;  %v1370_v49 = vld [vmem:[%s1701_s1 + $0x1c] sm:$0xf] }
  0x8c   : > { %1344 = vmatprep.subr.msk.bf16.mxu0 %vm206_vm1, %v201_v54  ;;  %v208_v57 = vsel %vm206_vm1, %v200_v55, 0  ;;  %1405 = vmatpush3.bf16.msra.mxu1 %v307_v56 }
  0x8d   : > { %231 = vmatpush1.bf16.msra.mxu0 %v208_v57  ;;  %1406 = vmatprep.mubr.msk.bf16.mxu1 %vm1493_vm0, %v1492_v3 }
  0x8e   : > { %1347 = vmatprep.subr.msk.bf16.mxu0 %vm206_vm1, %v1557_v13  ;;  %v413_v60 = vpop.permute.xlu0 %412  ;;  %1410 = vmatprep.subr.bf16.mxu1 %v1492_v3  ;;  %v415_v61 = vpop.permute.xlu1 %414 }
  0x8f   : > { %v418_v62 = vsel %vm416_vm4, %v413_v60, %v415_v61  ;;  %v417_v1 = vsel %vm416_vm4, %v411_v58, %v413_v60  ;;  %v429_v2 = vsel %vm206_vm1, %v415_v61, 0 }
  0x90   : > { %1345 = vmatmul.mubr.msk.bf16.vlgmr.msra.gmra.mxu0 %vm202_vm3, %v1343_v53  ;;  %v423_v5 = vsel %vm206_vm1, %v417_v1, 0  ;;  %v1374_v53 = vld [vmem:[%s1701_s1 + $0x20] sm:$0xf] }
  0x91   : > { %324 = vmatpush1.bf16.msra.mxu0 %v301_v59  ;;  %341 = vmatprep.mubr.bf16.mxu0 %v1494_v6 }
  0x92   : > { %1351 = vmatprep.subr.msk.bf16.mxu0 %vm206_vm1, %v418_v62  ;;  %v536_v0 = vpop.permute.xlu0 %535  ;;  %v538_v4 = vpop.permute.xlu1 %537 }
  0x93   : > { %1407 = vmatmul.mubr.msk.bf16.vlgmr.msra.gmra.mxu1 %vm202_vm3, %v173_v63  ;;  %v542_v12 = vsel %vm541_vm5, %v536_v0, %v538_v4 }
  0x94   : > { %1411 = vmatpush3.bf16.msra.mxu1 %v429_v2  ;;  %1412 = vmatprep.mubr.msk.bf16.mxu1 %vm1493_vm0, %v1492_v3  ;;  %v548_v15 = vsel %vm206_vm1, %v542_v12, 0 }
  0x95   : > { %1416 = vmatprep.subr.bf16.mxu1 %v1492_v3 }
  0x96   : > { %v540_v7 = vpop.permute.xlu0 %539  ;;  %v661_v9 = vpop.permute.xlu1 %660 }
  0x97   : > { %v543_v8 = vsel %vm541_vm5, %v538_v4, %v540_v7  ;;  %v554_v13 = vsel %vm206_vm1, %v540_v7, 0 }
  0x98   : > { %1348 = vmatmul.mubr.msk.bf16.vlgmr.msra.gmra.mxu0 %vm202_vm3, %v173_v63 }
  0x99   : > { %446 = vmatpush1.bf16.msra.mxu0 %v423_v5  ;;  %463 = vmatprep.mubr.bf16.mxu0 %v1494_v6 }
  0x9a   : > { %1355 = vmatprep.subr.msk.bf16.mxu0 %vm206_vm1, %v543_v8  ;;  %v663_v11 = vpop.permute.xlu0 %662  ;;  %v665_v14 = vpop.permute.xlu1 %664 }
  0x9b   : > { %1413 = vmatmul.mubr.msk.bf16.vlgmr.msra.gmra.mxu1 %vm202_vm3, %v1350_v10  ;;  %v668_v17 = vsel %vm666_vm6, %v663_v11, %v665_v14  ;;  %v667_v20 = vsel %vm666_vm6, %v661_v9, %v663_v11  ;;  %v679_v21 = vsel %vm206_vm1, %v665_v14, 0 }
  0x9c   : > { %1417 = vmatpush3.bf16.msra.mxu1 %v554_v13  ;;  %1418 = vmatprep.mubr.msk.bf16.mxu1 %vm1493_vm0, %v1492_v3  ;;  %v673_v23 = vsel %vm206_vm1, %v667_v20, 0 }
  0x9d   : > { %1422 = vmatprep.subr.bf16.mxu1 %v1492_v3 }
  0x9e   : > { %v786_v16 = vpop.permute.xlu0 %785  ;;  %v788_v18 = vpop.permute.xlu1 %787 }
  0x9f   : > { %v792_v28 = vsel %vm791_vm7, %v786_v16, %v788_v18 }
  0xa0   : > { %1352 = vmatmul.mubr.msk.bf16.vlgmr.msra.gmra.mxu0 %vm202_vm3, %v1350_v10  ;;  %v798_v31 = vsel %vm206_vm1, %v792_v28, 0 }
  0xa1   : > { %571 = vmatpush1.bf16.msra.mxu0 %v548_v15  ;;  %588 = vmatprep.mubr.bf16.mxu0 %v1494_v6 }
  0xa2   : > { %1359 = vmatprep.subr.msk.bf16.mxu0 %vm206_vm1, %v668_v17  ;;  %v790_v22 = vpop.permute.xlu0 %789  ;;  %v911_v24 = vpop.permute.xlu1 %910 }
  0xa3   : > { %1419 = vmatmul.mubr.msk.bf16.vlgmr.msra.gmra.mxu1 %vm202_vm3, %v1354_v19  ;;  %v793_v25 = vsel %vm791_vm7, %v788_v18, %v790_v22  ;;  %v804_v29 = vsel %vm206_vm1, %v790_v22, 0 }
  0xa4   : > { %1423 = vmatpush3.bf16.msra.mxu1 %v679_v21  ;;  %1424 = vmatprep.mubr.msk.bf16.mxu1 %vm1493_vm0, %v1492_v3 }
  0xa5   : > { %1428 = vmatprep.subr.bf16.mxu1 %v1492_v3 }
  0xa6   : > { %v913_v26 = vpop.permute.xlu0 %912  ;;  %v915_v30 = vpop.permute.xlu1 %914 }
  0xa7   : > { %v918_v33 = vsel %vm916_vm8, %v913_v26, %v915_v30  ;;  %v917_v36 = vsel %vm916_vm8, %v911_v24, %v913_v26  ;;  %v929_v37 = vsel %vm206_vm1, %v915_v30, 0 }
  0xa8   : > { %1356 = vmatmul.mubr.msk.bf16.vlgmr.msra.gmra.mxu0 %vm202_vm3, %v1354_v19  ;;  %v923_v39 = vsel %vm206_vm1, %v917_v36, 0 }
  0xa9   : > { %696 = vmatpush1.bf16.msra.mxu0 %v673_v23  ;;  %713 = vmatprep.mubr.bf16.mxu0 %v1494_v6 }
  0xaa   : > { %1363 = vmatprep.subr.msk.bf16.mxu0 %vm206_vm1, %v793_v25  ;;  %v1036_v32 = vpop.permute.xlu0 %1035  ;;  %v1038_v34 = vpop.permute.xlu1 %1037 }
  0xab   : > { %1425 = vmatmul.mubr.msk.bf16.vlgmr.msra.gmra.mxu1 %vm202_vm3, %v1358_v27  ;;  %v1042_v43 = vsel %vm1041_vm9, %v1036_v32, %v1038_v34 }
  0xac   : > { %1429 = vmatpush3.bf16.msra.mxu1 %v804_v29  ;;  %1430 = vmatprep.mubr.msk.bf16.mxu1 %vm1493_vm0, %v1492_v3  ;;  %v1048_v47 = vsel %vm206_vm1, %v1042_v43, 0 }
  0xad   : > { %1434 = vmatprep.subr.bf16.mxu1 %v1492_v3 }
  0xae   : > { %v1040_v38 = vpop.permute.xlu0 %1039  ;;  %v1161_v40 = vpop.permute.xlu1 %1160 }
  0xaf   : > { %v1043_v41 = vsel %vm1041_vm9, %v1038_v34, %v1040_v38  ;;  %v1054_v44 = vsel %vm206_vm1, %v1040_v38, 0 }
  0xb0   : > { %1360 = vmatmul.mubr.msk.bf16.vlgmr.msra.gmra.mxu0 %vm202_vm3, %v1358_v27 }
  0xb1   : > { %821 = vmatpush1.bf16.msra.mxu0 %v798_v31  ;;  %838 = vmatprep.mubr.bf16.mxu0 %v1494_v6 }
  0xb2   : > { %1367 = vmatprep.subr.msk.bf16.mxu0 %vm206_vm1, %v918_v33  ;;  %v1163_v45 = vpop.permute.xlu0 %1162  ;;  %v1165_v46 = vpop.permute.xlu1 %1164 }
  0xb3   : > { %1431 = vmatmul.mubr.msk.bf16.vlgmr.msra.gmra.mxu1 %vm202_vm3, %v1362_v35  ;;  %v1168_v48 = vsel %vm1166_vm10, %v1163_v45, %v1165_v46  ;;  %v1167_v50 = vsel %vm1166_vm10, %v1161_v40, %v1163_v45  ;;  %v1179_v51 = vsel %vm206_vm1, %v1165_v46, 0 }
  0xb4   : > { %1435 = vmatpush3.bf16.msra.mxu1 %v929_v37  ;;  %1436 = vmatprep.mubr.msk.bf16.mxu1 %vm1493_vm0, %v1492_v3  ;;  %v1173_v52 = vsel %vm206_vm1, %v1167_v50, 0 }
  0xb5   : > { %1440 = vmatprep.subr.bf16.mxu1 %v1492_v3 }
  0xb8   : > { %1364 = vmatmul.mubr.msk.bf16.vlgmr.msra.gmra.mxu0 %vm202_vm3, %v1362_v35 }
  0xb9   : > { %946 = vmatpush1.bf16.msra.mxu0 %v923_v39  ;;  %963 = vmatprep.mubr.bf16.mxu0 %v1494_v6 }
  0xba   : > { %1371 = vmatprep.subr.msk.bf16.mxu0 %vm206_vm1, %v1043_v41 }
  0xbb   : > { %1437 = vmatmul.mubr.msk.bf16.vlgmr.msra.gmra.mxu1 %vm202_vm3, %v1366_v42 }
  0xbc   : > { %1441 = vmatpush3.bf16.msra.mxu1 %v1054_v44  ;;  %1442 = vmatprep.mubr.msk.bf16.mxu1 %vm1493_vm0, %v1492_v3 }
  0xbd   : > { %1446 = vmatprep.subr.bf16.mxu1 %v1492_v3 }
  0xc0   : > { %1368 = vmatmul.mubr.msk.bf16.vlgmr.msra.gmra.mxu0 %vm202_vm3, %v1366_v42 }
  0xc1   : > { %1071 = vmatpush1.bf16.msra.mxu0 %v1048_v47  ;;  %1088 = vmatprep.mubr.bf16.mxu0 %v1494_v6 }
  0xc2   : > { %1375 = vmatprep.subr.msk.bf16.mxu0 %vm206_vm1, %v1168_v48 }
  0xc3   : > { %1443 = vmatmul.mubr.msk.bf16.vlgmr.msra.gmra.mxu1 %vm202_vm3, %v1370_v49 }
  0xc4   : > { %1447 = vmatpush3.bf16.msra.mxu1 %v1179_v51  ;;  %1448 = vmatprep.mubr.msk.bf16.mxu1 %vm1493_vm0, %v1492_v3 }
  0xc8   : > { %1372 = vmatmul.mubr.msk.bf16.vlgmr.msra.gmra.mxu0 %vm202_vm3, %v1370_v49 }
  0xc9   : > { %1196 = vmatpush1.bf16.msra.mxu0 %v1173_v52  ;;  %1213 = vmatprep.mubr.bf16.mxu0 %v1494_v6 }
  0xcb   : > { %1449 = vmatmul.mubr.msk.bf16.vlgmr.msra.gmra.mxu1 %vm202_vm3, %v1374_v53 }
  0xd0   : > { %1376 = vmatmul.mubr.msk.bf16.vlgmr.msra.gmra.mxu0 %vm202_vm3, %v1374_v53 }
 0x14b   : > { %v291_v54 = vpop.f32.mrf.mxu1 }
 0x14d   : > { %v1402_v55 = vpop.f32.mrf.mxu1 }
 0x14f   : > { %v294_v57 = vpop.f32.mrf.mxu1 }
 0x150   : > { %v250_v56 = vpop.f32.mrf.mxu0 }
 0x151   : > { %v1403_v59 = vpop.f32.mrf.mxu1 }
 0x152   : > { %v252_v58 = vpop.f32.mrf.mxu0 }
 0x153   : > { %v384_v60 = vpop.f32.mrf.mxu1 }
 0x154   : > { %v254_v3 = vpop.f32.mrf.mxu0  ;;  %v385_v40 = vadd.f32 %v384_v60, %v291_v54 }
 0x155   : > { %v1408_v62 = vpop.f32.mrf.mxu1 }
 0x156   : > { %v255_v61 = vpop.f32.mrf.mxu0 }
 0x157   : > { %v387_v6 = vpop.f32.mrf.mxu1 }
 0x158   : > { %v343_v63 = vpop.f32.mrf.mxu0 }
 0x159   : > { %v1409_v1 = vpop.f32.mrf.mxu1  ;;  %v344_v45 = vadd.f32 %v343_v63, %v250_v56 }
 0x15a   : > { %v345_v0 = vpop.f32.mrf.mxu0 }
 0x15b   : > { %v506_v4 = vpop.f32.mrf.mxu1  ;;  %v346_v49 = vadd.f32 %v345_v0, %v252_v58 }
 0x15c   : > { %v347_v2 = vpop.f32.mrf.mxu0  ;;  %v514_v43 = vadd.f32 %v506_v4, %v385_v40 }
 0x15d   : > { %v1414_v7 = vpop.f32.mrf.mxu1 }
 0x15e   : > { %v348_v5 = vpop.f32.mrf.mxu0 }
 0x15f   : > { %v509_v9 = vpop.f32.mrf.mxu1 }
 0x160   : > { %v465_v8 = vpop.f32.mrf.mxu0 }
 0x161   : > { %v1415_v11 = vpop.f32.mrf.mxu1  ;;  %v512_v50 = vadd.f32 %v465_v8, %v344_v45  ;;  %v1269_v8 = vpop.permute.xlu0 %1268 }
 0x162   : > { %v467_v10 = vpop.f32.mrf.mxu0 }
 0x163   : > { %v631_v13 = vpop.f32.mrf.mxu1  ;;  %v513_v55 = vadd.f32 %v467_v10, %v346_v49 }
 0x164   : > { %v469_v12 = vpop.f32.mrf.mxu0  ;;  %v639_v47 = vadd.f32 %v631_v13, %v514_v43 }
 0x165   : > { %v1420_v15 = vpop.f32.mrf.mxu1 }
 0x166   : > { %v470_v14 = vpop.f32.mrf.mxu0 }
 0x167   : > { %v634_v17 = vpop.f32.mrf.mxu1 }
 0x168   : > { %v590_v16 = vpop.f32.mrf.mxu0 }
 0x169   : > { %v1421_v19 = vpop.f32.mrf.mxu1  ;;  %v637_v57 = vadd.f32 %v590_v16, %v512_v50 }
 0x16a   : > { %v592_v18 = vpop.f32.mrf.mxu0 }
 0x16b   : > { %v756_v21 = vpop.f32.mrf.mxu1  ;;  %v638_v54 = vadd.f32 %v592_v18, %v513_v55 }
 0x16c   : > { %v594_v20 = vpop.f32.mrf.mxu0  ;;  %v764_v52 = vadd.f32 %v756_v21, %v639_v47 }
 0x16d   : > { %v1426_v23 = vpop.f32.mrf.mxu1 }
 0x16e   : > { %v595_v22 = vpop.f32.mrf.mxu0 }
 0x16f   : > { %v759_v25 = vpop.f32.mrf.mxu1 }
 0x170   : > { %v715_v24 = vpop.f32.mrf.mxu0 }
 0x171   : > { %v1427_v27 = vpop.f32.mrf.mxu1  ;;  %v762_v60 = vadd.f32 %v715_v24, %v637_v57 }
 0x172   : > { %v717_v26 = vpop.f32.mrf.mxu0 }
 0x173   : > { %v881_v29 = vpop.f32.mrf.mxu1  ;;  %v763_v56 = vadd.f32 %v717_v26, %v638_v54 }
 0x174   : > { %v719_v28 = vpop.f32.mrf.mxu0  ;;  %v889_v3 = vadd.f32 %v881_v29, %v764_v52 }
 0x175   : > { %v1432_v31 = vpop.f32.mrf.mxu1 }
 0x176   : > { %v720_v30 = vpop.f32.mrf.mxu0 }
 0x177   : > { %v884_v33 = vpop.f32.mrf.mxu1 }
 0x178   : > { %v840_v32 = vpop.f32.mrf.mxu0 }
 0x179   : > { %v1433_v35 = vpop.f32.mrf.mxu1  ;;  %v887_v63 = vadd.f32 %v840_v32, %v762_v60 }
 0x17a   : > { %v842_v34 = vpop.f32.mrf.mxu0 }
 0x17b   : > { %v1006_v37 = vpop.f32.mrf.mxu1  ;;  %v888_v0 = vadd.f32 %v842_v34, %v763_v56 }
 0x17c   : > { %v844_v36 = vpop.f32.mrf.mxu0  ;;  %v1014_v6 = vadd.f32 %v1006_v37, %v889_v3 }
 0x17d   : > { %v1438_v39 = vpop.f32.mrf.mxu1 }
 0x17e   : > { %v845_v38 = vpop.f32.mrf.mxu0 }
 0x17f   : > { %v1009_v42 = vpop.f32.mrf.mxu1 }
 0x180   : > { %v965_v41 = vpop.f32.mrf.mxu0 }
 0x181   : > { %v1439_v46 = vpop.f32.mrf.mxu1  ;;  %v1012_v5 = vadd.f32 %v965_v41, %v887_v63 }
 0x182   : > { %v967_v44 = vpop.f32.mrf.mxu0 }
 0x183   : > { %v1131_v51 = vpop.f32.mrf.mxu1  ;;  %v1013_v11 = vadd.f32 %v967_v44, %v888_v0 }
 0x184   : > { %v969_v48 = vpop.f32.mrf.mxu0  ;;  %v1139_v4 = vadd.f32 %v1131_v51, %v1014_v6 }
 0x185   : > { %v1444_v59 = vpop.f32.mrf.mxu1 }
 0x186   : > { %v970_v53 = vpop.f32.mrf.mxu0 }
 0x187   : > { %v1134_v62 = vpop.f32.mrf.mxu1 }
 0x188   : > { %v1090_v61 = vpop.f32.mrf.mxu0 }
 0x189   : > { %v1445_v2 = vpop.f32.mrf.mxu1  ;;  %v1137_v12 = vadd.f32 %v1090_v61, %v1012_v5 }
 0x18a   : > { %v1092_v1 = vpop.f32.mrf.mxu0 }
 0x18b   : > { %v1256_v7 = vpop.f32.mrf.mxu1  ;;  %v1138_v16 = vadd.f32 %v1092_v1, %v1013_v11 }
 0x18c   : > { %v1094_v58 = vpop.f32.mrf.mxu0  ;;  %v1264_v9 = vadd.f32 %v1256_v7, %v1139_v4 }
 0x18d   : > { %v1450_v13 = vpop.f32.mrf.mxu1 }
 0x18e   : > { %v1095_v10 = vpop.f32.mrf.mxu0  ;;  %v1273_v14 = vadd.f32 %v1269_v8, %v1264_v9 }
 0x18f   : > { %v1259_v18 = vpop.f32.mrf.mxu1 }
 0x190   : > { %v1215_v15 = vpop.f32.mrf.mxu0  ;;  %v1276_v19 = vmax.f32 %v1273_v14, 0.0 }
 0x191   : > { %v1262_v17 = vadd.f32 %v1215_v15, %v1137_v12  ;;  %v1451_v23 = vpop.f32.mrf.mxu1 }
 0x192   : > { %v1217_v20 = vpop.f32.mrf.mxu0  ;;  %1280 = vst.msk [vmem:[%s170_s24 + $0x10] sm:$0xff] %vm1279_vm11, %v1276_v19 }
 0x193   : > { %v1271_v21 = vadd.f32 %v1269_v8, %v1262_v17  ;;  %v1263_v22 = vadd.f32 %v1217_v20, %v1138_v16 }
 0x194   : > { %v1219_v24 = vpop.f32.mrf.mxu0 }
 0x195   : > { %v1274_v25 = vmax.f32 %v1271_v21, 0.0  ;;  %v1272_v26 = vadd.f32 %v1269_v8, %v1263_v22 }
 0x196   : > { %v1220_v27 = vpop.f32.mrf.mxu0 }
 0x197   : > { %1277 = vst [vmem:[%s170_s24] sm:$0xff] %v1274_v25  ;;  %v1275_v28 = vmax.f32 %v1272_v26, 0.0 }
 0x199   : > { %1278 = vst [vmem:[%s170_s24 + $0x8] sm:$0xff] %v1275_v28 }
 0x19a PF: > { %s13_s12 = sadd.s32 1, %s1489_s12  }
 0x19b   : > { %p10_p4 = scmp.ge.s32.totalorder %s13_s12, 4  }
 0x19d   :  { %12 = sbr.rel (!%p10_p4) target bundleno = 1 (0x1), region = 70 }

</bundles_post_ra>
